<compile_context>
chip_gen: v6e
topology: v6e:2x2x1
jax: 0.10.0
libtpu: 0.0.40
codegen_flags: <defaults>
</compile_context>

<pallas_src>
import functools

import jax
import jax.numpy as jnp
from jax import lax
from jax.experimental import pallas as pl
from jax.experimental.pallas import tpu as pltpu


# ---------------------------------------------------------------------------
# Kernel
# ---------------------------------------------------------------------------
def _residual_block_kernel(x_ref, halo_ref, w_ref, b_ref, o_ref):
    # x_ref:    (1, Cin, TL)       input tile, L on the lane axis.
    # halo_ref: (1, 1, Cin+1, 2)   augmented neighbour columns [left, right];
    #                              all-zero at the global sequence boundary.
    # w_ref:    (Cout, 3*(Cin+1))  folded 3-tap weights, tap-major.
    # b_ref:    (Cout, 1)          folded bias.
    # o_ref:    (1, Cout, TL)      output tile (lane-dense store).
    x = x_ref[0].astype(jnp.float32)                      # (Cin, TL)
    halo = halo_ref[0, 0].astype(jnp.float32)             # (Cin+1, 2)
    tl = x.shape[1]

    # Homogeneous coordinates: append a ones channel so the stage-1 bias folds
    # exactly through the zero-padded 3-tap conv.
    ones = jnp.ones((1, tl), jnp.float32)
    xa = jnp.concatenate([x, ones], axis=0)               # (Cin+1, TL)

    # Lane-index mask (cheap VPU work; broadcast against the sublane axis).
    col = lax.broadcasted_iota(jnp.int32, (1, tl), 1)

    # xa_m1[:, l] = xa[:, l-1]; column 0 comes from the left halo.
    xa_m1 = jnp.where(col == 0, halo[:, 0:1],
                      pltpu.roll(xa, shift=1, axis=1))
    # xa_p1[:, l] = xa[:, l+1]; column TL-1 comes from the right halo.
    # (left-roll by 1 expressed as a non-negative roll by TL-1)
    xa_p1 = jnp.where(col == tl - 1, halo[:, 1:2],
                      pltpu.roll(xa, shift=tl - 1, axis=1))

    # Stack the three taps (sublane concat) and do ONE fused MXU contraction.
    xs = jnp.concatenate([xa_m1, xa, xa_p1], axis=0)      # (3*(Cin+1), TL)
    y = jnp.dot(w_ref[...], xs, preferred_element_type=jnp.float32) + b_ref[...]

    # Final ReLU of the block.
    o_ref[0] = jnp.maximum(y, 0.0).astype(o_ref.dtype)


# ---------------------------------------------------------------------------
# Wrapper
# ---------------------------------------------------------------------------
def _pick_l_tile(length, cin, cout, max_tile=2048, vmem_budget_bytes=4 << 20):
    """Largest multiple-of-128 divisor of `length` within the VMEM tile budget."""
    if length % 128 != 0:
        return length                      # single full-L block (block == array dim)
    per_col = 4 * 2 * (cin + cout + 1)     # f32, double-buffered in+out columns
    budget_cols = max(128, vmem_budget_bytes // per_col)
    target = min(length, max_tile, (budget_cols // 128) * 128)
    tl = max(128, target - target % 128)
    while tl > 128 and length % tl != 0:
        tl -= 128
    return tl


def _build_halo(x, l_tile):
    """Per-tile augmented halo columns.

    halo[n, j, :, 0] = [x[n, :, j*TL - 1]; 1]   (left neighbour column)
    halo[n, j, :, 1] = [x[n, :, (j+1)*TL]; 1]   (right neighbour column)
    and all-zero at the global boundary (matching zero padding of the
    intermediate activation, ones channel included).
    """
    n, cin, length = x.shape
    n_lt = length // l_tile
    if n_lt == 1:
        return jnp.zeros((n, 1, cin + 1, 2), x.dtype)
    ones = jnp.ones((n, 1, n_lt - 1), x.dtype)
    left = x[:, :, l_tile - 1::l_tile][:, :, : n_lt - 1]          # (n, cin, n_lt-1)
    right = x[:, :, l_tile::l_tile]                               # (n, cin, n_lt-1)
    left = jnp.pad(jnp.concatenate([left, ones], axis=1),
                   ((0, 0), (0, 0), (1, 0)))                      # zeros for tile 0
    right = jnp.pad(jnp.concatenate([right, ones], axis=1),
                    ((0, 0), (0, 0), (0, 1)))                     # zeros for last tile
    halo = jnp.stack([left, right], axis=-1)                      # (n, cin+1, n_lt, 2)
    return jnp.transpose(halo, (0, 2, 1, 3))                      # (n, n_lt, cin+1, 2)


@functools.partial(jax.jit, static_argnames=("l_tile",))
def residual_block_forward(x, w_cat, b_cat, l_tile=None):
    """x: (N, Cin, L) float32 in PyTorch Conv1d (NCW) layout -> (N, Cout, L)."""
    n, cin, length = x.shape
    cout = w_cat.shape[0]
    if l_tile is None:
        l_tile = _pick_l_tile(length, cin, cout)
    assert length % l_tile == 0, "l_tile must divide L"
    assert l_tile == length or l_tile % 128 == 0, "partial L tiles must be lane aligned"
    n_lt = length // l_tile

    halo = _build_halo(x, l_tile)

    tile_bytes = 4 * l_tile * (cin + cout + 1)
    vmem_limit = int(min(32 * 1024 * 1024, max(16 * 1024 * 1024, 8 * tile_bytes)))

    kernel = pl.pallas_call(
        _residual_block_kernel,
        out_shape=jax.ShapeDtypeStruct((n, cout, length), jnp.float32),
        grid_spec=pltpu.PrefetchScalarGridSpec(
            num_scalar_prefetch=0,
            grid=(n, n_lt),
            in_specs=[
                pl.BlockSpec((1, cin, l_tile), lambda i, j: (i, 0, j)),
                pl.BlockSpec((1, 1, cin + 1, 2), lambda i, j: (i, j, 0, 0)),
                pl.BlockSpec((cout, 3 * (cin + 1)), lambda i, j: (0, 0)),
                pl.BlockSpec((cout, 1), lambda i, j: (0, 0)),
            ],
            out_specs=pl.BlockSpec((1, cout, l_tile), lambda i, j: (i, 0, j)),
        ),
        compiler_params=pltpu.CompilerParams(
            dimension_semantics=("parallel", "parallel"),
            vmem_limit_bytes=vmem_limit,
        ),
    )
    return kernel(x, halo, w_cat, b_cat)


# ---------------------------------------------------------------------------
# Parameters: raw Conv1d + BatchNorm1d (eval mode), BN + affine folding
# ---------------------------------------------------------------------------
def make_params(key, cin, cmid, cout):
    ks = jax.random.split(key, 18)

    def bn(k0, k1, k2, k3, c):
        gamma = 1.0 + 0.1 * jax.random.normal(k0, (c,), jnp.float32)
        beta = 0.1 * jax.random.normal(k1, (c,), jnp.float32)
        mean = 0.1 * jax.random.normal(k2, (c,), jnp.float32)
        var = 0.5 + 0.1 * jnp.abs(jax.random.normal(k3, (c,), jnp.float32))
        return gamma, beta, mean, var

    return {
        "w1": 0.3 * jax.random.normal(ks[0], (cmid, cin, 1), jnp.float32),
        "b1": 0.1 * jax.random.normal(ks[1], (cmid,), jnp.float32),
        "bn1": bn(ks[2], ks[3], ks[4], ks[5], cmid),
        "w2": 0.3 * jax.random.normal(ks[6], (cmid, cmid, 3), jnp.float32),
        "b2": 0.1 * jax.random.normal(ks[7], (cmid,), jnp.float32),
        "bn2": bn(ks[8], ks[9], ks[10], ks[11], cmid),
        "w3": 0.3 * jax.random.normal(ks[12], (cout, cmid, 1), jnp.float32),
        "b3": 0.1 * jax.random.normal(ks[13], (cout,), jnp.float32),
        "bn3": bn(ks[14], ks[15], ks[16], ks[17], cout),
    }


def _fold_bn(w, b, bn, eps=1e-5):
    gamma, beta, mean, var = bn
    scale = gamma / jnp.sqrt(var + eps)
    return w * scale[:, None, None], (b - mean) * scale + beta


def fold_residual_block_params(p, eps=1e-5):
    """Fold BN (eval mode) and the three affine convs into one 3-tap conv on
    the homogeneous input [x; 1]: returns w_cat (Cout, 3*(Cin+1)), b_cat (Cout, 1)."""
    w1, c1 = _fold_bn(p["w1"], p["b1"], p["bn1"], eps)      # (Cmid, Cin, 1), (Cmid,)
    w2, c2 = _fold_bn(p["w2"], p["b2"], p["bn2"], eps)      # (Cmid, Cmid, 3), (Cmid,)
    w3, c3 = _fold_bn(p["w3"], p["b3"], p["bn3"], eps)      # (Cout, Cmid, 1), (Cout,)
    a1 = jnp.concatenate([w1[:, :, 0], c1[:, None]], axis=1)   # (Cmid, Cin+1)
    a3 = w3[:, :, 0]                                            # (Cout, Cmid)
    taps = [a3 @ w2[:, :, k] @ a1 for k in range(3)]            # tap k multiplies x[l+k-1]
    w_cat = jnp.concatenate(taps, axis=1)                       # (Cout, 3*(Cin+1))
    b_cat = (a3 @ c2 + c3)[:, None]                             # (Cout, 1)
    return w_cat, b_cat


# ---------------------------------------------------------------------------
# Pure-JAX reference of the original (un-folded) forward, eval-mode BN
# ---------------------------------------------------------------------------
def reference_forward(x, p, eps=1e-5):
    def conv_bn(h, w, b, bn, pad):
        gamma, beta, mean, var = bn
        out = lax.conv_general_dilated(
            h, w, window_strides=(1,), padding=[(pad, pad)],
            dimension_numbers=("NCH", "OIH", "NCH"))
        out = out + b[None, :, None]
        scale = (gamma / jnp.sqrt(var + eps))[None, :, None]
        return (out - mean[None, :, None]) * scale + beta[None, :, None]

    h = conv_bn(x, p["w1"], p["b1"], p["bn1"], 0)
    h = conv_bn(h, p["w2"], p["b2"], p["bn2"], 1)
    h = conv_bn(h, p["w3"], p["b3"], p["bn3"], 0)
    # make_equal_channel branch is dead code in the original forward.
    return jnp.maximum(h, 0.0)


# ---------------------------------------------------------------------------
if __name__ == "__main__":
    N, CIN, CMID, COUT, L = 2, 4, 16, 8, 512
    key = jax.random.PRNGKey(0)
    kx, kp = jax.random.split(key)

    x = jax.random.normal(kx, (N, CIN, L), jnp.float32)      # PyTorch NCW layout
    raw = make_params(kp, CIN, CMID, COUT)
    w_cat, b_cat = fold_residual_block_params(raw)

    ref = reference_forward(x, raw)

    # Auto-picked tile (single full-L block per batch element here).
    out = jax.block_until_ready(residual_block_forward(x, w_cat, b_cat))
    assert out.shape == (N, COUT, L)
    assert jnp.allclose(out, ref, atol=2e-4, rtol=2e-4), "Pallas output mismatch"

    # Forced multi-tile path (4 tiles of 128) to exercise the cross-tile halo.
    out_tiled = jax.block_until_ready(
        residual_block_forward(x, w_cat, b_cat, l_tile=128))
    assert jnp.allclose(out_tiled, ref, atol=2e-4, rtol=2e-4), "tiled output mismatch"

    print("KERNEL_OK")
</pallas_src>

<mosaic_0001>
module attributes {stable_mosaic.version = 11 : i64} {
  func.func @_residual_block_kernel(%arg0: i32, %arg1: i32, %arg2: memref<1x4x512xf32, #tpu.memory_space<vmem>>, %arg3: memref<1x1x5x2xf32, #tpu.memory_space<vmem>>, %arg4: memref<8x15xf32, #tpu.memory_space<vmem>>, %arg5: memref<8x1xf32, #tpu.memory_space<vmem>>, %arg6: memref<1x8x512xf32, #tpu.memory_space<vmem>>) attributes {dimension_semantics = [#tpu.dimension_semantics<parallel>, #tpu.dimension_semantics<parallel>], iteration_bounds = array<i64: 2, 1>, scalar_prefetch = 0 : i64, scratch_operands = 0 : i64, tpu.core_type = #tpu.core_type<tc>, window_params = [{transform_indices = @transform_0, window_bounds = array<i64: 1, 4, 512>}, {transform_indices = @transform_1, window_bounds = array<i64: 1, 1, 5, 2>}, {pipeline_mode = #tpu.pipeline_mode<synchronous>, transform_indices = @transform_2, window_bounds = array<i64: 8, 15>}, {pipeline_mode = #tpu.pipeline_mode<synchronous>, transform_indices = @transform_3, window_bounds = array<i64: 8, 1>}, {transform_indices = @transform_4, window_bounds = array<i64: 1, 8, 512>}]} {
    %c0 = arith.constant 0 : index
    %c0_0 = arith.constant 0 : index
    %c0_1 = arith.constant 0 : index
    %0 = vector.load %arg2[%c0, %c0_0, %c0_1] : memref<1x4x512xf32, #tpu.memory_space<vmem>>, vector<1x4x512xf32>
    %1 = vector.shape_cast %0 : vector<1x4x512xf32> to vector<4x512xf32>
    %c0_2 = arith.constant 0 : index
    %c0_3 = arith.constant 0 : index
    %c0_4 = arith.constant 0 : index
    %c0_5 = arith.constant 0 : index
    %2 = vector.load %arg3[%c0_2, %c0_3, %c0_4, %c0_5] : memref<1x1x5x2xf32, #tpu.memory_space<vmem>>, vector<1x1x5x2xf32>
    %3 = vector.shape_cast %2 : vector<1x1x5x2xf32> to vector<5x2xf32>
    %cst = arith.constant 1.000000e+00 : f32
    %4 = vector.broadcast %cst : f32 to vector<1x512xf32>
    %5 = tpu.concatenate %1, %4 in 0 : vector<4x512xf32>, vector<1x512xf32> -> vector<5x512xf32>
    %6 = tpu.iota {dimensions = array<i32: 1>} : vector<1x512xi32>
    %c0_i32 = arith.constant 0 : i32
    %7 = vector.broadcast %c0_i32 : i32 to vector<1x512xi32>
    %8 = arith.cmpi eq, %6, %7 : vector<1x512xi32>
    %9 = vector.extract_strided_slice %3 {offsets = [0, 0], sizes = [5, 1], strides = [1, 1]} : vector<5x2xf32> to vector<5x1xf32>
    %c1_i32 = arith.constant 1 : i32
    %10 = tpu.dynamic_rotate %5 by %c1_i32 dim 1 : vector<5x512xf32>, i32 -> vector<5x512xf32>
    %11 = vector.shape_cast %8 : vector<1x512xi1> to vector<1x512xi1>
    %12 = vector.broadcast %11 : vector<1x512xi1> to vector<5x512xi1>
    %13 = vector.shape_cast %9 : vector<5x1xf32> to vector<5x1xf32>
    %14 = vector.broadcast %13 : vector<5x1xf32> to vector<5x512xf32>
    %15 = arith.select %12, %14, %10 : vector<5x512xi1>, vector<5x512xf32>
    %c511_i32 = arith.constant 511 : i32
    %16 = vector.broadcast %c511_i32 : i32 to vector<1x512xi32>
    %17 = arith.cmpi eq, %6, %16 : vector<1x512xi32>
    %18 = vector.extract_strided_slice %3 {offsets = [0, 1], sizes = [5, 1], strides = [1, 1]} : vector<5x2xf32> to vector<5x1xf32>
    %c511_i32_6 = arith.constant 511 : i32
    %19 = tpu.dynamic_rotate %5 by %c511_i32_6 dim 1 : vector<5x512xf32>, i32 -> vector<5x512xf32>
    %20 = vector.shape_cast %17 : vector<1x512xi1> to vector<1x512xi1>
    %21 = vector.broadcast %20 : vector<1x512xi1> to vector<5x512xi1>
    %22 = vector.shape_cast %18 : vector<5x1xf32> to vector<5x1xf32>
    %23 = vector.broadcast %22 : vector<5x1xf32> to vector<5x512xf32>
    %24 = arith.select %21, %23, %19 : vector<5x512xi1>, vector<5x512xf32>
    %25 = tpu.concatenate %15, %5, %24 in 0 : vector<5x512xf32>, vector<5x512xf32>, vector<5x512xf32> -> vector<15x512xf32>
    %c0_7 = arith.constant 0 : index
    %c0_8 = arith.constant 0 : index
    %26 = vector.load %arg4[%c0_7, %c0_8] : memref<8x15xf32, #tpu.memory_space<vmem>>, vector<8x15xf32>
    %cst_9 = arith.constant dense<0.000000e+00> : vector<8x512xf32>
    %27 = tpu.matmul %26, %25, %cst_9 {dimension_numbers = #tpu.dot_dimension_numbers<[1], [0], [0], [1], [0, 0, 1, 1], [], []>} : vector<8x15xf32>, vector<15x512xf32>, vector<8x512xf32> -> vector<8x512xf32>
    %c0_10 = arith.constant 0 : index
    %c0_11 = arith.constant 0 : index
    %28 = vector.load %arg5[%c0_10, %c0_11] : memref<8x1xf32, #tpu.memory_space<vmem>>, vector<8x1xf32>
    %29 = vector.broadcast %28 : vector<8x1xf32> to vector<8x512xf32>
    %30 = arith.addf %27, %29 : vector<8x512xf32>
    %cst_12 = arith.constant 0.000000e+00 : f32
    %31 = vector.broadcast %cst_12 : f32 to vector<8x512xf32>
    %32 = arith.maximumf %30, %31 : vector<8x512xf32>
    %c0_13 = arith.constant 0 : index
    %c0_14 = arith.constant 0 : index
    %c0_15 = arith.constant 0 : index
    %33 = vector.load %arg6[%c0_13, %c0_14, %c0_15] : memref<1x8x512xf32, #tpu.memory_space<vmem>>, vector<1x8x512xf32>
    %34 = vector.shape_cast %33 : vector<1x8x512xf32> to vector<8x512xf32>
    %35 = vector.shape_cast %32 : vector<8x512xf32> to vector<1x8x512xf32>
    tpu.vector_store %arg6[%c0_13, %c0_14, %c0_15], %35 {strides = array<i32>} : memref<1x8x512xf32, #tpu.memory_space<vmem>>, vector<1x8x512xf32>,
    return
  }
  func.func @transform_0(%arg0: i32, %arg1: i32) -> (i32, i32, i32) {
    %c0_i32 = arith.constant 0 : i32
    %c0_i32_0 = arith.constant 0 : i32
    return %arg0, %c0_i32, %arg1 : i32, i32, i32
  }
  func.func @transform_1(%arg0: i32, %arg1: i32) -> (i32, i32, i32, i32) {
    %c0_i32 = arith.constant 0 : i32
    %c0_i32_0 = arith.constant 0 : i32
    %c0_i32_1 = arith.constant 0 : i32
    return %arg0, %arg1, %c0_i32, %c0_i32_0 : i32, i32, i32, i32
  }
  func.func @transform_2(%arg0: i32, %arg1: i32) -> (i32, i32) {
    %c0_i32 = arith.constant 0 : i32
    %c0_i32_0 = arith.constant 0 : i32
    %c0_i32_1 = arith.constant 0 : i32
    return %c0_i32, %c0_i32_0 : i32, i32
  }
  func.func @transform_3(%arg0: i32, %arg1: i32) -> (i32, i32) {
    %c0_i32 = arith.constant 0 : i32
    %c0_i32_0 = arith.constant 0 : i32
    %c0_i32_1 = arith.constant 0 : i32
    return %c0_i32, %c0_i32_0 : i32, i32
  }
  func.func @transform_4(%arg0: i32, %arg1: i32) -> (i32, i32, i32) {
    %c0_i32 = arith.constant 0 : i32
    %c0_i32_0 = arith.constant 0 : i32
    return %arg0, %c0_i32, %arg1 : i32, i32, i32
  }
}

</mosaic_0001>

<bundles_post_ra>
// kernel: residual_block_forward.1
= control target key start
LH: loop header
LB: loop body
LE: loop exit
PB: predicated region body
PF: predicated region fallthrough
CT: control target
= control target key end

     0   :  { %9 = vsyncpa [#allocation3], 0  ;;  %s1093_s0 = inlined_call_operand.hbm [shape: f32[2,4,512], index: 0, kind: input, shape index: {}]   ;;  %s1094_s1 = inlined_call_operand.vmem [shape: f32[2,1,5,2], index: 1, kind: input, shape index: {}]   ;;  %s1095_s2 = inlined_call_operand.vmem [shape: f32[8,15], index: 2, kind: input, shape index: {}]   ;;  %s1096_s3 = inlined_call_operand.vmem [shape: f32[8,1], index: 3, kind: input, shape index: {}]   ;;  %s1097_s4 = inlined_call_operand.hbm [shape: f32[2,8,512], index: 4, kind: output, shape index: {}]  }
   0x1   :  { %11 = vsyncpa [#allocation3 + $0x1], 0 }
   0x2   :  { %12 = vsyncpa [#allocation4], 0 }
   0x3   :  { %14 = vsyncpa [#allocation4 + $0x1], 0  ;;  %s910_s15 = smov 0   ;;  %s912_s16 = smov 0  }
   0x4   :  { %s914_s17 = smov 0   ;;  %s916_s18 = smov 0  }
   0x5   :  { %s918_s19 = smov 0   ;;  %s920_s20 = smov 0  }
   0x6 LB: > { %s672_s21 = sadd.s32 4294967295, %s876_s20   ;;  %s673_s22 = sadd.s32 4294967294, %s876_s20   ;;  %s876_s20 = sphi %s920_s20, %s20_s20   ;;  %s872_s19 = sphi %s918_s19, %s1109_s19   ;;  %s868_s18 = sphi %s916_s18, %s1108_s18   ;;  %s864_s17 = sphi %s914_s17, %s1107_s17   ;;  %s860_s16 = sphi %s912_s16, %s1106_s16   ;;  %s856_s15 = sphi %s910_s15, %s1105_s15  }
   0x7   : > { %s32_s23 = sadd.s32 1, %s872_s19  ;;  %s41_s24 = sadd.s32 1, %s864_s17 }
   0x8   : > { %p34_p0 = scmp.ge.s32.totalorder %s32_s23, 2  ;;  %p48_p1 = scmp.ne.s32.totalorder %s864_s17, %s860_s16 }
   0x9   : > { %p49_p2 = scmp.eq.s32.totalorder %s876_s20, 0  ;;  %p54_p3 = scmp.ne.s32.totalorder %s860_s16, %s856_s15 }
   0xa   : > { %s1111_s23 = smov (%p34_p0, %s32_s23), 0  ;;  %p55_p5 = scmp.eq.s32.totalorder %s672_s21, 0 }
   0xb   : > { %p951_p4 = por %p49_p2, %p48_p1  ;;  %s36_s26 = ssub.s32 %s872_s19, %s1111_s23 }
   0xc   : > { %p150_p6 = scmp.eq.s32.totalorder %s672_s21, 1  ;;  %p39_p7 = scmp.eq.s32.totalorder %s36_s26, 0 }
   0xd   : > { %p957_p8 = por %p55_p5, %p54_p3  ;;  %p156_p10 = scmp.eq.s32.totalorder %s673_s22, 1 }
   0xe   : > { %p961_p9 = por %p150_p6, %p48_p1  ;;  %p708_p13 = scmp.lt.s32.totalorder %s876_s20, 2 }
   0xf   : > { %s966_s29 = scalar_select %p39_p7, %s864_s17, %s41_s24  }
  0x10   : > { %p968_p11 = por %p156_p10, %p54_p3  ;;  %s182_s5 = sand.u32 1, %s864_s17  }
  0x11   : > { %s676_s6 = sshll.u32 %s182_s5, 4  ;;  %s694_s7 = sshll.u32 %s872_s19, 8 }
  0x12   : > { %s1101_s30 = scalar_select %p968_p11, 1, 0 }
  0x13   : > { %s194_s10 = scalar_lea.hbm %s1093_s0, %s694_s7  ;;  %s186_s11 = scalar_lea.vmem [#allocation2], %s676_s6 }
  0x14   : > { %s196_s12 = sshll.u32 %s186_s11, 4  ;;  %p981_p0 = pnand %p708_p13, %p951_p4  ;;  %s197_s12 = int_to_ptr.vmem [resolvable:$true] %s196_s12 }
  0x15   : > { %p679_p1 = scmp.ge.s32.totalorder %s876_s20, 1  ;;  %p211_p2 = scmp.lt.s32.totalorder %s876_s20, 3 }
  0x16   : > { %s183_s14 = scalar_lea.sflag [#allocation3], %s182_s5  ;;  %p770_p3 = pneg %p981_p0 }
  0x17   : > { %s781_s21 = scalar_lea.vmem %s197_s12, 256  ;;  %s878_s22 = smov [#allocation2]  }
  0x18   : > { %p782_p5 = scmp.ne.s32.totalorder %s197_s12, %s781_s21  ;;  %s786_s24 = sshll.u32 %s878_s22, 4  ;;  %s787_s24 = int_to_ptr.vmem [resolvable:$false] %s786_s24 }
  0x19   : > { %s788_s26 = scalar_lea.vmem %s787_s24, 512  ;;  %p789_p10 = scmp.lt.s32.totalorder %s197_s12, %s787_s24 }
  0x1a   : > { %p784_p6 = pnand %p782_p5, %p770_p3  ;;  %p790_p12 = scmp.lt.s32.totalorder %s788_s26, %s781_s21 }
  0x1c   : > { %p785_p7 = pneg %p784_p6  ;;  %p791_p4 = por %p790_p12, %p789_p10 }
  0x1e   : > { %p792_p13 = pnand %p791_p4, %p785_p7 }
  0x20   : > { %795 = shalt.err (!%p792_p13)
}
  0x21   : > { %703 = dma.hbm_to_vmem [thread:$0]  (!%p981_p0), %s194_s10, 256, %s197_s12, %s183_s14  }
  0x22   : > { %p212_p11 = pnand %p679_p1, %p211_p2 }
  0x23   : > { %s996_s25 = sand.u32 (!%p212_p11), 1, %s860_s16  }
  0x24   : > { %215 = sbr.rel (%p212_p11) target bundleno = 405 (0x195), region = 36  ;;  %s680_s5 = sshll.u32 (!%p212_p11), %s996_s25, 4 }
  0x25   : > { %s218_s6 = scalar_lea.sflag (!%p212_p11), [#allocation3], %s996_s25  ;;  %s221_s7 = scalar_lea.vmem (!%p212_p11), [#allocation2], %s680_s5 }
  0x29   : > { %847 = dma.done.wait (%p957_p8), %s218_s6, 256  }
  0x2a   : > { %849 = vsyncadd (%p957_p8), %s218_s6, 4294967040  ;;  %p254_p12 = scmp.lt.s32.totalorder %s868_s18, 1  ;;  %v879_v0 = vmov 1   ;;  %v880_v1 = vmov 0   ;;  %vm271_vm0 = vcmask 1043456   ;;  %v263_v3 = vld [vmem:[%s221_s7 + $0x8] sm:$0xff]  ;;  %v276_v13 = vlaneseq }
  0x2b   : > { %763 = vset.pattern.permute.xlu0 %v879_v0  ;;  %764 = vset.pattern.permute.xlu1 %v880_v1  ;;  %v262_v4 = vld [vmem:[%s221_s7] sm:$0xff]  ;;  %v1009_v5 = vsel %vm271_vm0, %v263_v3, 1.0  ;;  %v268_v7 = vcombine.high %v263_v3, %v263_v3  ;;  %s881_s27 = smov 127   ;;  %s882_s13 = smov 1   ;;  %v883_v11 = vmov 0.0   ;;  %vm377_vm4 = vcmask 1041408  }
  0x2c   : > { %s255_s8 = scalar_select %p254_p12, %s868_s18, 1  ;;  %v1011_v6 = vsel %vm271_vm0, %v262_v4, 1.0  ;;  %v267_v8 = vcombine.high %v262_v4, %v262_v4  ;;  %470 = vmatprep.mubr.f32.mxu0 %v883_v11  ;;  %541 = vmatprep.mubr.f32.mxu1 %v883_v11  ;;  %v383_v12 = vld [vmem:[%s1096_s3] sm:$0xff]  ;;  %v277_v14 = vand.u32 127, %v276_v13  ;;  %v354_v20 = vrot.slane %v1009_v5, 3 }
  0x2d   : > { %v1015_v9 = vsel %vm271_vm0, %v268_v7, 1.0  ;;  %v352_v21 = vrot.slane %v1011_v6, 3  ;;  %vm393_vm5 = vcmask 1046528   ;;  %vm372_vm6 = vcmask 1044480   ;;  %v382_v51 = vld [vmem:[%s1095_s2] sm:$0xff]  ;;  %s681_s26 = sshll.u32 %s996_s25, 5 }
  0x2e   : > { %s682_s9 = sshll.u32 %s255_s8, 3  ;;  %v273_v10 = vsel %vm271_vm0, %v267_v8, 1.0  ;;  %v280_v17 = vadd.s32 384, %v277_v14  ;;  %vm327_vm1 = vcmp.lt.s32.totalorder %v277_v14, 127  ;;  %v355_v22 = vrot.slane %v1015_v9, 3  ;;  %s695_s5 = sshll.u32 %s868_s18, 9 }
  0x2f   : > { %s260_s12 = scalar_lea.vmem %s1094_s1, %s682_s9  ;;  %v353_v23 = vrot.slane %v273_v10, 3  ;;  %vm293_vm3 = vcmp.lt.s32.totalorder %v277_v14, 1  ;;  %vm281_vm7 = vcmp.eq.s32.totalorder %v277_v14, 0  ;;  %vm389_vm8 = vcmask 121856   ;;  %s252_s6 = scalar_lea.vmem [#allocation5], %s681_s26 }
  0x30   : > { %v264_v2 = vld [vmem:[%s260_s12] sm:$0x1f]  ;;  %vm318_vm2 = vcmp.eq.s32.totalorder %v280_v17, 511  ;;  %s573_s7 = sshll.u32 %s252_s6, 4  ;;  %s1051_s10 = scalar_lea.hbm %s1097_s4, %s695_s5  ;;  %s574_s7 = int_to_ptr.vmem [resolvable:$true] %s573_s7 }
  0x31   : > { %308 = vperm.xlu1 %764, %v264_v2   ;;  %341 = vperm.xlu0 %763, %v264_v2   ;;  %s557_s18 = scalar_lea.sflag [#allocation4], %s996_s25  ;;  %s796_s11 = scalar_lea.vmem %s574_s7, 512 }
  0x32   : > { %p797_p8 = scmp.ne.s32.totalorder %s574_s7, %s796_s11  ;;  %s884_s12 = smov [#allocation5]  }
  0x34   : > { %p798_p11 = pnand %p797_p8, %p961_p9 }
  0x35   : > { %323 = vrot.lane.b32.xlu1 %v1009_v5, %s881_s27  ;;  %319 = vrot.lane.b32.xlu0 %v1011_v6, %s881_s27 }
  0x36   : > { %765 = vset.pattern.permute.xlu0 %v880_v1  ;;  %p799_p0 = pneg %p798_p11 }
  0x39   : > { %325 = vrot.lane.b32.xlu1 %v1015_v9, %s881_s27  ;;  %321 = vrot.lane.b32.xlu0 %v273_v10, %s881_s27  ;;  %s800_s27 = sshll.u32 %s884_s12, 4  ;;  %s801_s27 = int_to_ptr.vmem [resolvable:$false] %s800_s27 }
  0x3a   : > { %p803_p1 = scmp.lt.s32.totalorder %s574_s7, %s801_s27 }
  0x3d   : > { %287 = vrot.lane.b32.xlu1 %v273_v10, %s882_s13  ;;  %285 = vrot.lane.b32.xlu0 %v1011_v6, %s882_s13 }
  0x41   : > { %291 = vrot.lane.b32.xlu1 %v1015_v9, %s882_s13  ;;  %289 = vrot.lane.b32.xlu0 %v1009_v5, %s882_s13  ;;  %s802_s13 = scalar_lea.vmem %s801_s27, 1024 }
  0x42   : > { %p804_p2 = scmp.lt.s32.totalorder %s802_s13, %s796_s11 }
  0x44   : > { %p805_p3 = por %p804_p2, %p803_p1 }
  0x45   : > { %386 = vperm.xlu0 %765, %v383_v12  }
  0x46   : > { %p806_p5 = pnand %p805_p3, %p799_p0 }
  0xac   : > { %v309_v15 = vpop.permute.xlu1 %308  ;;  %v342_v16 = vpop.permute.xlu0 %341 }
  0xb0   : > { %v324_v18 = vpop.permute.xlu1 %323  ;;  %v320_v19 = vpop.permute.xlu0 %319 }
  0xb4   : > { %v326_v24 = vpop.permute.xlu1 %325  ;;  %v322_v25 = vpop.permute.xlu0 %321 }
  0xb5   : > { %v328_v26 = vsel %vm327_vm1, %v324_v18, %v326_v24  ;;  %v331_v27 = vsel %vm327_vm1, %v326_v24, %v320_v19  ;;  %v329_v28 = vsel %vm327_vm1, %v322_v25, %v324_v18  ;;  %v330_v29 = vsel %vm327_vm1, %v320_v19, %v322_v25 }
  0xb6   : > { %v347_v30 = vsel %vm318_vm2, %v342_v16, %v331_v27  ;;  %v366_v31 = vrot.slane %v328_v26, 6  ;;  %v364_v32 = vrot.slane %v330_v29, 6  ;;  %v365_v33 = vrot.slane %v329_v28, 6 }
  0xb7   : > { %v367_v34 = vrot.slane %v347_v30, 6 }
  0xb8   : > { %v288_v35 = vpop.permute.xlu1 %287  ;;  %v286_v36 = vpop.permute.xlu0 %285  ;;  %v379_v37 = vsel %vm377_vm4, %v353_v23, %v365_v33  ;;  %v378_v38 = vsel %vm377_vm4, %v352_v21, %v364_v32  ;;  %v380_v42 = vsel %vm377_vm4, %v354_v20, %v366_v31 }
  0xb9   : > { %v296_v39 = vsel %vm293_vm3, %v286_v36, %v288_v35  ;;  %683 = vmatprep.subr.msk.mxu0 %vm393_vm5, %v379_v37  ;;  %v381_v40 = vsel %vm377_vm4, %v355_v22, %v367_v34 }
  0xba   : > { %684 = vmatpush1.msk.msra.mxu0 %vm393_vm5, %v378_v38  ;;  %686 = vmatprep.subr.msk.mxu1 %vm393_vm5, %v381_v40  ;;  %v374_v41 = vsel %vm372_vm6, %v296_v39, %v353_v23 }
  0xbb   : > { %436 = vmatprep.subr.mxu0 %v374_v41  ;;  %687 = vmatpush1.msk.msra.mxu1 %vm393_vm5, %v380_v42 }
  0xbc   : > { %v292_v43 = vpop.permute.xlu1 %291  ;;  %v290_v44 = vpop.permute.xlu0 %289 }
  0xbd   : > { %v297_v45 = vsel %vm293_vm3, %v292_v43, %v286_v36  ;;  %v294_v46 = vsel %vm293_vm3, %v290_v44, %v292_v43  ;;  %v295_v47 = vsel %vm293_vm3, %v288_v35, %v290_v44 }
  0xbe   : > { %v376_v48 = vsel %vm372_vm6, %v294_v46, %v355_v22  ;;  %v311_v49 = vsel %vm281_vm7, %v309_v15, %v297_v45  ;;  %v375_v50 = vsel %vm372_vm6, %v295_v47, %v354_v20 }
  0xbf   : > { %507 = vmatprep.subr.mxu1 %v376_v48  ;;  %v373_v52 = vsel %vm372_vm6, %v311_v49, %v352_v21 }
  0xc0   : > { %437 = vmatpush1.msra.mxu0 %v373_v52  ;;  %508 = vmatpush1.msra.mxu1 %v375_v50  ;;  %v387_v53 = vpop.permute.xlu0 %386 }
  0xc1   : > { %685 = vmatmul.mubr.msk.f32.vlgmr.msra.gmra.mxu0 %vm389_vm8, %v382_v51  ;;  %688 = vmatmul.mubr.msk.f32.vlgmr.msra.gmra.mxu1 %vm389_vm8, %v382_v51 }
 0x181   : > { %v543_v54 = vpop.f32.mrf.mxu1  ;;  %v472_v55 = vpop.f32.mrf.mxu0 }
 0x182   : > { %v544_v56 = vadd.f32 %v543_v54, %v387_v53  ;;  %v473_v57 = vadd.f32 %v472_v55, %v387_v53 }
 0x183   : > { %v474_v58 = vpop.f32.mrf.mxu0  ;;  %v545_v59 = vpop.f32.mrf.mxu1 }
 0x184   : > { %v550_v60 = vmax.f32 %v544_v56, 0.0  ;;  %v548_v61 = vmax.f32 %v473_v57, 0.0  ;;  %v475_v62 = vadd.f32 %v474_v58, %v387_v53  ;;  %v546_v63 = vadd.f32 %v545_v59, %v387_v53 }
 0x186   : > { %554 = vst [vmem:[%s252_s6 + $0x10] sm:$0xff] %v550_v60  ;;  %552 = vst [vmem:[%s252_s6] sm:$0xff] %v548_v61  ;;  %v549_v0 = vmax.f32 %v475_v62, 0.0  ;;  %v551_v1 = vmax.f32 %v546_v63, 0.0 }
 0x188   : > { %553 = vst [vmem:[%s252_s6 + $0x8] sm:$0xff] %v549_v0  ;;  %555 = vst [vmem:[%s252_s6 + $0x18] sm:$0xff] %v551_v1 }
 0x189   : > { %809 = shalt.err (!%p806_p5)
}
 0x18a   : > { %s810_s14 = scalar_lea.hbm %s1051_s10, 512  ;;  %s814_s22 = scalar_lea.hbm %s1097_s4, 1024 }
 0x18b   : > { %p811_p6 = scmp.ne.s32.totalorder %s1051_s10, %s810_s14  ;;  %p815_p4 = scmp.lt.s32.totalorder %s1051_s10, %s1097_s4 }
 0x18c   : > { %p816_p13 = scmp.lt.s32.totalorder %s814_s22, %s810_s14 }
 0x18d   : > { %p812_p7 = pnand %p811_p6, %p961_p9 }
 0x18e   : > { %p817_p12 = por %p816_p13, %p815_p4 }
 0x18f   : > { %p813_p10 = pneg %p812_p7 }
 0x191   : > { %p818_p8 = pnand %p817_p12, %p813_p10 }
 0x193   : > { %821 = shalt.err (!%p818_p8)
}
 0x194   : > { %698 = dma.vmem_to_hbm [thread:$0]  (%p961_p9), %s574_s7, 512, %s1051_s10, %s557_s18  }
 0x195 PF: > { %s585_s5 = sand.u32 1, %s856_s15   ;;  %p1103_p11 = scmp.ne.s32.totalorder %s1101_s30, 0 }
 0x196   : > { %p1104_p0 = scmp.ge.s32.totalorder %s876_s20, 2  ;;  %s586_s6 = scalar_lea.sflag [#allocation4], %s585_s5 }
 0x198   : > { %p705_p1 = pnand %p1104_p0, %p1103_p11 }
 0x19a   : > { %p706_p2 = pneg %p705_p1 }
 0x19c   : > { %851 = dma.done.wait (%p706_p2), %s586_s6, 512  }
 0x19d   : > { %853 = vsyncadd (%p706_p2), %s586_s6, 4294966784  ;;  %s20_s20 = sadd.s32 1, %s876_s20   ;;  %s1105_s15 = smov %s860_s16 }
 0x19e   : > { %p17_p3 = scmp.ge.s32.totalorder %s20_s20, 4   ;;  %s1106_s16 = smov %s864_s17 }
 0x19f   : > { %s1107_s17 = smov %s966_s29  ;;  %s1108_s18 = smov %s872_s19 }
 0x1a0   : > { %s1109_s19 = smov %s1111_s23  ;;  %19 = sbr.rel (!%p17_p3) target bundleno = 6 (0x6), region = 84 }
 0x1a5   :  { %591 = vsyncpa [#allocation3], 1 }
 0x1a6   :  { %593 = vsyncpa [#allocation3 + $0x1], 1 }
 0x1a7   :  { %594 = vsyncpa [#allocation4], 1 }
 0x1a8   :  { %596 = vsyncpa [#allocation4 + $0x1], 1 }

</bundles_post_ra>
